<compile_context>
chip_gen: v5e
topology: v5e:2x2
jax: 0.10.0
libtpu: 0.0.40
codegen_flags: <defaults>
</compile_context>

<pallas_src>
import functools

import jax
import jax.numpy as jnp
from jax.experimental import pallas as pl
from jax.experimental.pallas import tpu as pltpu

LANES = 128
PACK = 8 * LANES  # 1024: full (8,128) vreg worth of batch elements


def _round_up(n, m):
    return ((n + m - 1) // m) * m


def mlp_kernel(params_ref, x_ref, o_ref, *, in_size, hidden, classes):
    """Sublane-packed, feature-major VPU MLP.

    params_ref: SMEM f32[P] — packed [w1 (hidden,in) row-major | b1 (hidden) |
                                      w2 (classes,hidden) row-major | b2 (classes)]
    x_ref:      VMEM f32[in_size, bt//128, 128]   (batch packed on sublanes+lanes)
    o_ref:      VMEM f32[classes, bt//128, 128]   (full-vreg, lane-dense stores)
    """
    w1_off = 0
    b1_off = w1_off + hidden * in_size
    w2_off = b1_off + hidden
    b2_off = w2_off + classes * hidden

    # Per-feature slabs: each is [bt//128, 128] of full 8-sublane vregs.
    x = [x_ref[i] for i in range(in_size)]

    # Layer 1: h[j] = tanh(b1[j] + sum_i w1[j, i] * x[i])   (VPU FMAs + EUP tanh)
    h = []
    for j in range(hidden):
        acc = x[0] * params_ref[w1_off + j * in_size]
        for i in range(1, in_size):
            acc = acc + x[i] * params_ref[w1_off + j * in_size + i]
        h.append(jnp.tanh(acc + params_ref[b1_off + j]))

    # Layer 2: o[c] = b2[c] + sum_j w2[c, j] * h[j]
    for c in range(classes):
        acc = h[0] * params_ref[w2_off + c * hidden]
        for j in range(1, hidden):
            acc = acc + h[j] * params_ref[w2_off + c * hidden + j]
        o_ref[c] = acc + params_ref[b2_off + c]  # full-vreg store


@functools.partial(
    jax.jit,
    static_argnames=("input_size", "hidden_size", "num_classes", "block_batch"))
def net_forward_feature_major(x_fm, params, *, input_size, hidden_size,
                              num_classes, block_batch=262144):
    """x_fm: [input_size, batch] f32  ->  [num_classes, batch] f32.

    No wrapper transposes; keep activations feature-major across the graph and
    call this directly. `block_batch` (lanes per grid step, rounded to 1024) is
    the only tuning knob; default 256K keeps double-buffered VMEM ~10 MiB,
    comfortably inside v7x's 64 MiB as well as v5e/v6e's 128 MiB.
    """
    assert x_fm.shape[0] == input_size
    batch = x_fm.shape[1]
    block_batch = max(_round_up(block_batch, PACK), PACK)

    # Pad batch only to a multiple of 1024, then pick bt so padding waste from
    # making the grid evenly divisible stays negligible.
    padded0 = _round_up(max(batch, 1), PACK)
    if padded0 <= block_batch:
        bt = padded0
        padded = padded0
    else:
        n_tiles = -(-padded0 // block_batch)
        bt = _round_up(-(-padded0 // n_tiles), PACK)
        padded = n_tiles * bt

    xt = x_fm.astype(jnp.float32)
    if padded != batch:
        xt = jnp.pad(xt, ((0, 0), (0, padded - batch)))
    # Sublane-pack the batch (contiguous reshape, free): [in, padded//128, 128].
    xp = xt.reshape(input_size, padded // LANES, LANES)

    sub = bt // LANES  # sublane-group count per tile (multiple of 8)
    kernel = functools.partial(
        mlp_kernel, in_size=input_size, hidden=hidden_size, classes=num_classes)

    out = pl.pallas_call(
        kernel,
        out_shape=jax.ShapeDtypeStruct(
            (num_classes, padded // LANES, LANES), jnp.float32),
        grid=(padded // bt,),
        in_specs=[
            # Packed params: resident in SMEM across all batch tiles.
            pl.BlockSpec(memory_space=pltpu.MemorySpace.SMEM),
            # x tile: [in_size, bt//128, 128], auto double-buffered over batch.
            pl.BlockSpec((input_size, sub, LANES), lambda i: (0, i, 0)),
        ],
        out_specs=pl.BlockSpec((num_classes, sub, LANES), lambda i: (0, i, 0)),
        compiler_params=pltpu.CompilerParams(
            # "parallel" lets v7x's 2 TCs split batch tiles; no-op on v5e/v6e.
            dimension_semantics=("parallel",),
            vmem_limit_bytes=32 << 20,  # explicit; ~10 MiB used at default bt
        ),
    )(params, xp)

    return out.reshape(num_classes, padded)[:, :batch]


def net_forward(x, params, *, input_size, hidden_size, num_classes,
                block_batch=262144):
    """Compatibility shim for [batch, input_size] callers.

    Transposes once at the model boundary; prefer net_forward_feature_major to
    avoid the extra HBM read+write on memory-bound large batches.
    """
    out_fm = net_forward_feature_major(
        x.T, params, input_size=input_size, hidden_size=hidden_size,
        num_classes=num_classes, block_batch=block_batch)
    return out_fm.T


def init_linear_params(key, fan_in, fan_out):
    # Mimic torch.nn.Linear default init: U(-1/sqrt(fan_in), 1/sqrt(fan_in)),
    # weight stored in PyTorch layout [out_features, in_features].
    kw, kb = jax.random.split(key)
    bound = 1.0 / (fan_in ** 0.5)
    w = jax.random.uniform(kw, (fan_out, fan_in), jnp.float32, -bound, bound)
    b = jax.random.uniform(kb, (fan_out,), jnp.float32, -bound, bound)
    return w, b


def pack_params(w1, b1, w2, b2):
    return jnp.concatenate(
        [w1.reshape(-1), b1.reshape(-1), w2.reshape(-1), b2.reshape(-1)]
    ).astype(jnp.float32)


if __name__ == "__main__":
    input_size, hidden_size, num_classes = 3, 4, 2
    batch = 8

    root = jax.random.PRNGKey(0)
    k_x, k_h1, k_h2 = jax.random.split(root, 3)

    x = jax.random.normal(k_x, (batch, input_size), jnp.float32)
    w1, b1 = init_linear_params(k_h1, input_size, hidden_size)
    w2, b2 = init_linear_params(k_h2, hidden_size, num_classes)
    params = pack_params(w1, b1, w2, b2)

    # Reference in plain JAX (same math as the PyTorch forward).
    ref = jnp.tanh(x @ w1.T + b1) @ w2.T + b2

    # Compatibility path ([batch, features] in/out).
    out = net_forward(x, params, input_size=input_size,
                      hidden_size=hidden_size, num_classes=num_classes)
    jax.block_until_ready(out)
    assert out.shape == (batch, num_classes)
    assert jnp.allclose(out, ref, atol=2e-5, rtol=1e-5), (out, ref)

    # Preferred feature-major path (no wrapper transposes at all).
    out_fm = net_forward_feature_major(
        x.T, params, input_size=input_size, hidden_size=hidden_size,
        num_classes=num_classes)
    jax.block_until_ready(out_fm)
    assert out_fm.shape == (num_classes, batch)
    assert jnp.allclose(out_fm.T, ref, atol=2e-5, rtol=1e-5), (out_fm.T, ref)

    print("KERNEL_OK")
</pallas_src>

<mosaic_0001>
module attributes {stable_mosaic.version = 11 : i64} {
  func.func @mlp_kernel(%arg0: i32, %arg1: memref<26xf32, #tpu.memory_space<smem>>, %arg2: memref<3x8x128xf32, #tpu.memory_space<vmem>>, %arg3: memref<2x8x128xf32, #tpu.memory_space<vmem>>) attributes {dimension_semantics = [#tpu.dimension_semantics<parallel>], iteration_bounds = array<i64: 1>, scalar_prefetch = 0 : i64, scratch_operands = 0 : i64, tpu.core_type = #tpu.core_type<tc>, window_params = [{transform_indices = @transform_0, window_bounds = array<i64: 26>}, {transform_indices = @transform_1, window_bounds = array<i64: 3, 8, 128>}, {transform_indices = @transform_2, window_bounds = array<i64: 2, 8, 128>}]} {
    %c0 = arith.constant 0 : index
    %c0_0 = arith.constant 0 : index
    %c0_1 = arith.constant 0 : index
    %0 = vector.load %arg2[%c0, %c0_0, %c0_1] : memref<3x8x128xf32, #tpu.memory_space<vmem>>, vector<1x8x128xf32>
    %1 = vector.shape_cast %0 : vector<1x8x128xf32> to vector<8x128xf32>
    %c1 = arith.constant 1 : index
    %c0_2 = arith.constant 0 : index
    %c0_3 = arith.constant 0 : index
    %2 = vector.load %arg2[%c1, %c0_2, %c0_3] : memref<3x8x128xf32, #tpu.memory_space<vmem>>, vector<1x8x128xf32>
    %3 = vector.shape_cast %2 : vector<1x8x128xf32> to vector<8x128xf32>
    %c2 = arith.constant 2 : index
    %c0_4 = arith.constant 0 : index
    %c0_5 = arith.constant 0 : index
    %4 = vector.load %arg2[%c2, %c0_4, %c0_5] : memref<3x8x128xf32, #tpu.memory_space<vmem>>, vector<1x8x128xf32>
    %5 = vector.shape_cast %4 : vector<1x8x128xf32> to vector<8x128xf32>
    %c0_6 = arith.constant 0 : index
    %6 = memref.load %arg1[%c0_6] : memref<26xf32, #tpu.memory_space<smem>>
    %7 = vector.broadcast %6 : f32 to vector<8x128xf32>
    %8 = arith.mulf %1, %7 : vector<8x128xf32>
    %c1_7 = arith.constant 1 : index
    %9 = memref.load %arg1[%c1_7] : memref<26xf32, #tpu.memory_space<smem>>
    %10 = vector.broadcast %9 : f32 to vector<8x128xf32>
    %11 = arith.mulf %3, %10 : vector<8x128xf32>
    %12 = arith.addf %8, %11 : vector<8x128xf32>
    %c2_8 = arith.constant 2 : index
    %13 = memref.load %arg1[%c2_8] : memref<26xf32, #tpu.memory_space<smem>>
    %14 = vector.broadcast %13 : f32 to vector<8x128xf32>
    %15 = arith.mulf %5, %14 : vector<8x128xf32>
    %16 = arith.addf %12, %15 : vector<8x128xf32>
    %c12 = arith.constant 12 : index
    %17 = memref.load %arg1[%c12] : memref<26xf32, #tpu.memory_space<smem>>
    %18 = vector.broadcast %17 : f32 to vector<8x128xf32>
    %19 = arith.addf %16, %18 : vector<8x128xf32>
    %20 = math.tanh %19 : vector<8x128xf32>
    %c3 = arith.constant 3 : index
    %21 = memref.load %arg1[%c3] : memref<26xf32, #tpu.memory_space<smem>>
    %22 = vector.broadcast %21 : f32 to vector<8x128xf32>
    %23 = arith.mulf %1, %22 : vector<8x128xf32>
    %c4 = arith.constant 4 : index
    %24 = memref.load %arg1[%c4] : memref<26xf32, #tpu.memory_space<smem>>
    %25 = vector.broadcast %24 : f32 to vector<8x128xf32>
    %26 = arith.mulf %3, %25 : vector<8x128xf32>
    %27 = arith.addf %23, %26 : vector<8x128xf32>
    %c5 = arith.constant 5 : index
    %28 = memref.load %arg1[%c5] : memref<26xf32, #tpu.memory_space<smem>>
    %29 = vector.broadcast %28 : f32 to vector<8x128xf32>
    %30 = arith.mulf %5, %29 : vector<8x128xf32>
    %31 = arith.addf %27, %30 : vector<8x128xf32>
    %c13 = arith.constant 13 : index
    %32 = memref.load %arg1[%c13] : memref<26xf32, #tpu.memory_space<smem>>
    %33 = vector.broadcast %32 : f32 to vector<8x128xf32>
    %34 = arith.addf %31, %33 : vector<8x128xf32>
    %35 = math.tanh %34 : vector<8x128xf32>
    %c6 = arith.constant 6 : index
    %36 = memref.load %arg1[%c6] : memref<26xf32, #tpu.memory_space<smem>>
    %37 = vector.broadcast %36 : f32 to vector<8x128xf32>
    %38 = arith.mulf %1, %37 : vector<8x128xf32>
    %c7 = arith.constant 7 : index
    %39 = memref.load %arg1[%c7] : memref<26xf32, #tpu.memory_space<smem>>
    %40 = vector.broadcast %39 : f32 to vector<8x128xf32>
    %41 = arith.mulf %3, %40 : vector<8x128xf32>
    %42 = arith.addf %38, %41 : vector<8x128xf32>
    %c8 = arith.constant 8 : index
    %43 = memref.load %arg1[%c8] : memref<26xf32, #tpu.memory_space<smem>>
    %44 = vector.broadcast %43 : f32 to vector<8x128xf32>
    %45 = arith.mulf %5, %44 : vector<8x128xf32>
    %46 = arith.addf %42, %45 : vector<8x128xf32>
    %c14 = arith.constant 14 : index
    %47 = memref.load %arg1[%c14] : memref<26xf32, #tpu.memory_space<smem>>
    %48 = vector.broadcast %47 : f32 to vector<8x128xf32>
    %49 = arith.addf %46, %48 : vector<8x128xf32>
    %50 = math.tanh %49 : vector<8x128xf32>
    %c9 = arith.constant 9 : index
    %51 = memref.load %arg1[%c9] : memref<26xf32, #tpu.memory_space<smem>>
    %52 = vector.broadcast %51 : f32 to vector<8x128xf32>
    %53 = arith.mulf %1, %52 : vector<8x128xf32>
    %c10 = arith.constant 10 : index
    %54 = memref.load %arg1[%c10] : memref<26xf32, #tpu.memory_space<smem>>
    %55 = vector.broadcast %54 : f32 to vector<8x128xf32>
    %56 = arith.mulf %3, %55 : vector<8x128xf32>
    %57 = arith.addf %53, %56 : vector<8x128xf32>
    %c11 = arith.constant 11 : index
    %58 = memref.load %arg1[%c11] : memref<26xf32, #tpu.memory_space<smem>>
    %59 = vector.broadcast %58 : f32 to vector<8x128xf32>
    %60 = arith.mulf %5, %59 : vector<8x128xf32>
    %61 = arith.addf %57, %60 : vector<8x128xf32>
    %c15 = arith.constant 15 : index
    %62 = memref.load %arg1[%c15] : memref<26xf32, #tpu.memory_space<smem>>
    %63 = vector.broadcast %62 : f32 to vector<8x128xf32>
    %64 = arith.addf %61, %63 : vector<8x128xf32>
    %65 = math.tanh %64 : vector<8x128xf32>
    %c16 = arith.constant 16 : index
    %66 = memref.load %arg1[%c16] : memref<26xf32, #tpu.memory_space<smem>>
    %67 = vector.broadcast %66 : f32 to vector<8x128xf32>
    %68 = arith.mulf %20, %67 : vector<8x128xf32>
    %c17 = arith.constant 17 : index
    %69 = memref.load %arg1[%c17] : memref<26xf32, #tpu.memory_space<smem>>
    %70 = vector.broadcast %69 : f32 to vector<8x128xf32>
    %71 = arith.mulf %35, %70 : vector<8x128xf32>
    %72 = arith.addf %68, %71 : vector<8x128xf32>
    %c18 = arith.constant 18 : index
    %73 = memref.load %arg1[%c18] : memref<26xf32, #tpu.memory_space<smem>>
    %74 = vector.broadcast %73 : f32 to vector<8x128xf32>
    %75 = arith.mulf %50, %74 : vector<8x128xf32>
    %76 = arith.addf %72, %75 : vector<8x128xf32>
    %c19 = arith.constant 19 : index
    %77 = memref.load %arg1[%c19] : memref<26xf32, #tpu.memory_space<smem>>
    %78 = vector.broadcast %77 : f32 to vector<8x128xf32>
    %79 = arith.mulf %65, %78 : vector<8x128xf32>
    %80 = arith.addf %76, %79 : vector<8x128xf32>
    %c24 = arith.constant 24 : index
    %81 = memref.load %arg1[%c24] : memref<26xf32, #tpu.memory_space<smem>>
    %82 = vector.broadcast %81 : f32 to vector<8x128xf32>
    %83 = arith.addf %80, %82 : vector<8x128xf32>
    %c0_9 = arith.constant 0 : index
    %c0_10 = arith.constant 0 : index
    %c0_11 = arith.constant 0 : index
    %84 = vector.load %arg3[%c0_9, %c0_10, %c0_11] : memref<2x8x128xf32, #tpu.memory_space<vmem>>, vector<1x8x128xf32>
    %85 = vector.shape_cast %84 : vector<1x8x128xf32> to vector<8x128xf32>
    %86 = vector.shape_cast %83 : vector<8x128xf32> to vector<1x8x128xf32>
    tpu.vector_store %arg3[%c0_9, %c0_10, %c0_11], %86 {strides = array<i32>} : memref<2x8x128xf32, #tpu.memory_space<vmem>>, vector<1x8x128xf32>,
    %c20 = arith.constant 20 : index
    %87 = memref.load %arg1[%c20] : memref<26xf32, #tpu.memory_space<smem>>
    %88 = vector.broadcast %87 : f32 to vector<8x128xf32>
    %89 = arith.mulf %20, %88 : vector<8x128xf32>
    %c21 = arith.constant 21 : index
    %90 = memref.load %arg1[%c21] : memref<26xf32, #tpu.memory_space<smem>>
    %91 = vector.broadcast %90 : f32 to vector<8x128xf32>
    %92 = arith.mulf %35, %91 : vector<8x128xf32>
    %93 = arith.addf %89, %92 : vector<8x128xf32>
    %c22 = arith.constant 22 : index
    %94 = memref.load %arg1[%c22] : memref<26xf32, #tpu.memory_space<smem>>
    %95 = vector.broadcast %94 : f32 to vector<8x128xf32>
    %96 = arith.mulf %50, %95 : vector<8x128xf32>
    %97 = arith.addf %93, %96 : vector<8x128xf32>
    %c23 = arith.constant 23 : index
    %98 = memref.load %arg1[%c23] : memref<26xf32, #tpu.memory_space<smem>>
    %99 = vector.broadcast %98 : f32 to vector<8x128xf32>
    %100 = arith.mulf %65, %99 : vector<8x128xf32>
    %101 = arith.addf %97, %100 : vector<8x128xf32>
    %c25 = arith.constant 25 : index
    %102 = memref.load %arg1[%c25] : memref<26xf32, #tpu.memory_space<smem>>
    %103 = vector.broadcast %102 : f32 to vector<8x128xf32>
    %104 = arith.addf %101, %103 : vector<8x128xf32>
    %c1_12 = arith.constant 1 : index
    %c0_13 = arith.constant 0 : index
    %c0_14 = arith.constant 0 : index
    %105 = vector.load %arg3[%c1_12, %c0_13, %c0_14] : memref<2x8x128xf32, #tpu.memory_space<vmem>>, vector<1x8x128xf32>
    %106 = vector.shape_cast %105 : vector<1x8x128xf32> to vector<8x128xf32>
    %107 = vector.shape_cast %104 : vector<8x128xf32> to vector<1x8x128xf32>
    tpu.vector_store %arg3[%c1_12, %c0_13, %c0_14], %107 {strides = array<i32>} : memref<2x8x128xf32, #tpu.memory_space<vmem>>, vector<1x8x128xf32>,
    return
  }
  func.func @transform_0(%arg0: i32) -> i32 {
    %c0_i32 = arith.constant 0 : i32
    %c0_i32_0 = arith.constant 0 : i32
    return %c0_i32 : i32
  }
  func.func @transform_1(%arg0: i32) -> (i32, i32, i32) {
    %c0_i32 = arith.constant 0 : i32
    %c0_i32_0 = arith.constant 0 : i32
    %c0_i32_1 = arith.constant 0 : i32
    return %c0_i32, %arg0, %c0_i32_0 : i32, i32, i32
  }
  func.func @transform_2(%arg0: i32) -> (i32, i32, i32) {
    %c0_i32 = arith.constant 0 : i32
    %c0_i32_0 = arith.constant 0 : i32
    %c0_i32_1 = arith.constant 0 : i32
    return %c0_i32, %arg0, %c0_i32_0 : i32, i32, i32
  }
}

</mosaic_0001>

<bundles_post_ra>
// kernel: net_forward_feature_major.1
= control target key start
LH: loop header
LB: loop body
LE: loop exit
PB: predicated region body
PF: predicated region fallthrough
CT: control target
= control target key end

     0   :  { %7 = vsyncpa [#allocation3], 0  ;;  %s184_s12 = smov [#allocation2]   ;;  %s233_s0 = inlined_call_operand.vmem [shape: f32[26], index: 0, kind: input, shape index: {}]   ;;  %s234_s1 = inlined_call_operand.vmem [shape: f32[3,8,128], index: 1, kind: input, shape index: {}]   ;;  %s235_s2 = inlined_call_operand.vmem [shape: f32[2,8,128], index: 2, kind: output, shape index: {}]  }
   0x1   :  { %s13_s11 = sshll.u32 %s233_s0, 4  ;;  %s14_s11 = int_to_ptr.vmem [resolvable:$true] %s13_s11 }
   0x2   :  { %16 = dma.vmem_to_smem %s14_s11, 16, %s184_s12, [#allocation3]  }
   0x3   :  { %182 = dma.done.wait [#allocation3], 16  }
   0x4   :  { %183 = vsyncadd [#allocation3], 4294967280 }
   0x5   :  { %23 = sfence }
   0x6   :  { %s29_s13 = sld [smem:[#allocation2]]  ;;  %v24_v0 = vld [vmem:[%s234_s1] sm:$0xff]  ;;  %v133_v1 = vld [vmem:[%s234_s1 + $0x8] sm:$0xff]  ;;  %v134_v2 = vld [vmem:[%s234_s1 + $0x10] sm:$0xff] }
   0x7   :  { %s135_s14 = sld [smem:[#allocation2 + $0x1]] }
   0x8   :  { %s136_s15 = sld [smem:[#allocation2 + $0x2]] }
   0x9   :  { %s137_s16 = sld [smem:[#allocation2 + $0xc]] }
   0xa   :  { %s138_s19 = sld [smem:[#allocation2 + $0x3]] }
   0xb   :  { %s139_s0 = sld [smem:[#allocation2 + $0x4]] }
   0xc   :  { %v30_v3 = vstv %s29_s13  ;;  %s140_s24 = sld [smem:[#allocation2 + $0x5]] }
   0xd   :  { %v31_v4 = vmul.f32 %v30_v3, %v24_v0  ;;  %v33_v5 = vstv %s135_s14  ;;  %s212_s25 = sld [smem:[#allocation2 + $0xd]] }
   0xe   :  { %v34_v6 = vmul.f32 %v133_v1, %v33_v5  ;;  %v37_v7 = vstv %s136_s15  ;;  %s142_s26 = sld [smem:[#allocation2 + $0x6]] }
   0xf   :  { %v38_v8 = vmul.f32 %v134_v2, %v37_v7  ;;  %s143_s27 = sld [smem:[#allocation2 + $0x7]]  ;;  %v41_v11 = vstv %s137_s16 }
  0x10   :  { %v35_v9 = vadd.f32 %v34_v6, %v31_v4  ;;  %v45_v10 = vstv %s138_s19  ;;  %s144_s28 = sld [smem:[#allocation2 + $0x8]] }
  0x11   :  { %v46_v12 = vmul.f32 %v45_v10, %v24_v0  ;;  %v48_v13 = vstv %s139_s0  ;;  %s214_s29 = sld [smem:[#allocation2 + $0xe]] }
  0x12   :  { %v39_v14 = vadd.f32 %v38_v8, %v35_v9  ;;  %v49_v15 = vmul.f32 %v133_v1, %v48_v13  ;;  %v52_v16 = vstv %s140_s24  ;;  %s146_s1 = sld [smem:[#allocation2 + $0x9]] }
  0x13   :  { %v53_v17 = vmul.f32 %v134_v2, %v52_v16  ;;  %s147_s30 = sld [smem:[#allocation2 + $0xa]]  ;;  %v56_v21 = vstv %s212_s25 }
  0x14   :  { %v42_v18 = vadd.f32 %v41_v11, %v39_v14  ;;  %v50_v19 = vadd.f32 %v49_v15, %v46_v12  ;;  %v60_v20 = vstv %s142_s26  ;;  %s148_s3 = sld [smem:[#allocation2 + $0xb]] }
  0x15   :  { %v61_v22 = vmul.f32 %v60_v20, %v24_v0  ;;  %v63_v23 = vstv %s143_s27  ;;  %s217_s4 = sld [smem:[#allocation2 + $0xf]] }
  0x16   :  { %162 = vtanh.f32 %v42_v18  ;;  %v54_v24 = vadd.f32 %v53_v17, %v50_v19  ;;  %v64_v25 = vmul.f32 %v133_v1, %v63_v23  ;;  %v67_v26 = vstv %s144_s28  ;;  %s150_s5 = sld [smem:[#allocation2 + $0x10]] }
  0x17   :  { %v68_v27 = vmul.f32 %v134_v2, %v67_v26  ;;  %s151_s6 = sld [smem:[#allocation2 + $0x11]]  ;;  %v71_v31 = vstv %s214_s29 }
  0x18   :  { %v57_v28 = vadd.f32 %v56_v21, %v54_v24  ;;  %v65_v29 = vadd.f32 %v64_v25, %v61_v22  ;;  %v75_v30 = vstv %s146_s1  ;;  %s220_s7 = sld [smem:[#allocation2 + $0x12]] }
  0x19   :  { %v76_v32 = vmul.f32 %v75_v30, %v24_v0  ;;  %v78_v33 = vstv %s147_s30  ;;  %s222_s8 = sld [smem:[#allocation2 + $0x13]] }
  0x1a   :  { %164 = vtanh.f32 %v57_v28  ;;  %v69_v34 = vadd.f32 %v68_v27, %v65_v29  ;;  %v79_v35 = vmul.f32 %v133_v1, %v78_v33  ;;  %v82_v36 = vstv %s148_s3  ;;  %s155_s9 = sld [smem:[#allocation2 + $0x14]] }
  0x1b   :  { %v83_v37 = vmul.f32 %v134_v2, %v82_v36  ;;  %s156_s10 = sld [smem:[#allocation2 + $0x15]]  ;;  %v86_v42 = vstv %s217_s4 }
  0x1c   :  { %v163_v38 = vpop.eup %162  ;;  %v72_v39 = vadd.f32 %v71_v31, %v69_v34  ;;  %v80_v40 = vadd.f32 %v79_v35, %v76_v32  ;;  %v90_v41 = vstv %s150_s5  ;;  %s157_s11 = sld [smem:[#allocation2 + $0x16]] }
  0x1d   :  { %v93_v44 = vstv %s151_s6  ;;  %s158_s12 = sld [smem:[#allocation2 + $0x17]]  ;;  %v91_v45 = vmul.f32 %v163_v38, %v90_v41 }
  0x1e   :  { %166 = vtanh.f32 %v72_v39  ;;  %v84_v43 = vadd.f32 %v83_v37, %v80_v40  ;;  %s154_s13 = sld [smem:[#allocation2 + $0x18]]  ;;  %v97_v50 = vstv %s220_s7 }
  0x1f   :  { %s159_s14 = sld [smem:[#allocation2 + $0x19]]  ;;  %v101_v60 = vstv %s222_s8 }
  0x20   :  { %v165_v46 = vpop.eup %164  ;;  %v87_v47 = vadd.f32 %v86_v42, %v84_v43  ;;  %v109_v49 = vstv %s155_s9 }
  0x21   :  { %v94_v48 = vmul.f32 %v165_v46, %v93_v44  ;;  %v110_v51 = vmul.f32 %v163_v38, %v109_v49  ;;  %v112_v52 = vstv %s156_s10 }
  0x22   :  { %168 = vtanh.f32 %v87_v47  ;;  %v113_v54 = vmul.f32 %v165_v46, %v112_v52  ;;  %v116_v55 = vstv %s157_s11 }
  0x23   :  { %v95_v53 = vadd.f32 %v94_v48, %v91_v45  ;;  %v120_v61 = vstv %s158_s12 }
  0x24   :  { %v167_v56 = vpop.eup %166  ;;  %v114_v58 = vadd.f32 %v113_v54, %v110_v51  ;;  %v105_v3 = vstv %s154_s13 }
  0x25   :  { %v98_v57 = vmul.f32 %v167_v56, %v97_v50  ;;  %v117_v59 = vmul.f32 %v167_v56, %v116_v55  ;;  %v124_v4 = vstv %s159_s14 }
  0x27   :  { %v99_v62 = vadd.f32 %v98_v57, %v95_v53  ;;  %v118_v63 = vadd.f32 %v117_v59, %v114_v58 }
  0x28   :  { %v169_v0 = vpop.eup %168 }
  0x29   :  { %v102_v1 = vmul.f32 %v169_v0, %v101_v60  ;;  %v121_v2 = vmul.f32 %v169_v0, %v120_v61 }
  0x2b   :  { %v103_v5 = vadd.f32 %v102_v1, %v99_v62  ;;  %v122_v6 = vadd.f32 %v121_v2, %v118_v63 }
  0x2d   :  { %v106_v7 = vadd.f32 %v105_v3, %v103_v5  ;;  %v125_v8 = vadd.f32 %v124_v4, %v122_v6 }
  0x2f   :  { %107 = vst [vmem:[%s235_s2] sm:$0xff] %v106_v7 }
  0x30   :  { %160 = vst [vmem:[%s235_s2 + $0x8] sm:$0xff] %v125_v8 }
  0x31   :  { %132 = vsyncpa [#allocation3], 1 }

</bundles_post_ra>
